<compile_context>
chip_gen: v6e
topology: v6e:2x2x1
jax: 0.10.0
libtpu: 0.0.40
codegen_flags: <defaults>
</compile_context>

<pallas_src>
import functools

import jax
import jax.numpy as jnp
from jax.experimental import pallas as pl
from jax.experimental.pallas import tpu as pltpu


_DEFAULT_X_BLOCK_BYTES = 4 * 1024 * 1024   # f32-equivalent budget for one x tile
_VMEM_LIMIT_BYTES = 32 * 1024 * 1024       # conservative: fits every TPU generation


# ---------------------------------------------------------------------------
# Kernels
# ---------------------------------------------------------------------------

def _se_fused_kernel(x_ref, w1_ref, b1_ref, w2_ref, b2_ref, o_ref):
    """One batch row per grid step: full (C, T) block resident, single pass."""
    xf = x_ref[...].astype(jnp.float32)                        # (1, C, T)
    # 1/T already folded into w1, so a plain f32 sum over time is the mean path.
    m = jnp.sum(xf, axis=-1)                                   # (1, C)
    h = jnp.dot(m, w1_ref[...], preferred_element_type=jnp.float32) + b1_ref[...]
    h = jnp.maximum(h, 0.0)                                    # (1, C//s)
    z = jnp.dot(h, w2_ref[...], preferred_element_type=jnp.float32) + b2_ref[...]
    g = jax.nn.sigmoid(z)                                      # (1, C) f32 gates
    o_ref[...] = (xf * g[:, :, None]).astype(o_ref.dtype)


def _se_gates_kernel(x_ref, w1_ref, b1_ref, w2_ref, b2_ref, g_ref, acc_ref,
                     *, t_len, t_tile):
    """Pass 1: tiled time-sum (f32 accumulator) + tiny matmuls -> gates (1,C,1)."""
    t = pl.program_id(1)

    @pl.when(t == 0)
    def _():
        acc_ref[...] = jnp.zeros_like(acc_ref)

    xf = x_ref[...].astype(jnp.float32)                        # (1, C, t_tile)
    if t_len % t_tile != 0:
        # Ragged T: zero the unspecified padding columns of the boundary block.
        col = t * t_tile + jax.lax.broadcasted_iota(jnp.int32, xf.shape, 2)
        xf = jnp.where(col < t_len, xf, 0.0)
    acc_ref[...] += jnp.sum(xf, axis=-1)                       # exact f32 time-sum

    @pl.when(t == pl.num_programs(1) - 1)
    def _():
        m = acc_ref[...]                                       # sum over T; 1/T in w1
        h = jnp.dot(m, w1_ref[...], preferred_element_type=jnp.float32) + b1_ref[...]
        h = jnp.maximum(h, 0.0)
        z = jnp.dot(h, w2_ref[...], preferred_element_type=jnp.float32) + b2_ref[...]
        g = jax.nn.sigmoid(z)                                  # (1, C)
        g_ref[...] = g[:, :, None]                             # (1, C, 1) f32


def _se_scale_kernel(x_ref, g_ref, o_ref):
    """Pass 2: y = x * gate, pure lane-broadcast multiply per (1, C, T_TILE) tile."""
    xf = x_ref[...].astype(jnp.float32)                        # (1, C, T_TILE)
    o_ref[...] = (xf * g_ref[...]).astype(o_ref.dtype)         # gate: (1, C, 1) f32


# ---------------------------------------------------------------------------
# Wrappers
# ---------------------------------------------------------------------------

def _choose_t_tile(C, T, budget_bytes):
    """Largest lane-dense (multiple-of-128) T tile within the f32 VMEM budget."""
    if C * T * 4 <= budget_bytes:
        return T
    tile = max((budget_bytes // (C * 4)) // 128 * 128, 128)
    return min(tile, T)


def _se_connect_fused(x, w1_t, b1, w2_t, b2):
    B, C, T = x.shape
    Cs = w1_t.shape[1]
    itemsize = jnp.dtype(x.dtype).itemsize
    return pl.pallas_call(
        _se_fused_kernel,
        out_shape=jax.ShapeDtypeStruct((B, C, T), x.dtype),
        grid_spec=pltpu.PrefetchScalarGridSpec(
            num_scalar_prefetch=0,
            grid=(B,),
            in_specs=[
                pl.BlockSpec((1, C, T), lambda b: (b, 0, 0)),   # x, one batch row
                pl.BlockSpec((C, Cs), lambda b: (0, 0)),        # w1 (resident)
                pl.BlockSpec((1, Cs), lambda b: (0, 0)),        # b1
                pl.BlockSpec((Cs, C), lambda b: (0, 0)),        # w2
                pl.BlockSpec((1, C), lambda b: (0, 0)),         # b2
            ],
            out_specs=pl.BlockSpec((1, C, T), lambda b: (b, 0, 0)),
        ),
        compiler_params=pltpu.CompilerParams(
            dimension_semantics=("parallel",),
            vmem_limit_bytes=_VMEM_LIMIT_BYTES),
        cost_estimate=pl.CostEstimate(
            flops=2 * B * C * T + 4 * B * C * Cs,
            transcendentals=B * C,
            bytes_accessed=2 * B * C * T * itemsize),
    )(x, w1_t, b1, w2_t, b2)


def _se_connect_two_pass(x, w1_t, b1, w2_t, b2, x_block_bytes):
    B, C, T = x.shape
    Cs = w1_t.shape[1]
    itemsize = jnp.dtype(x.dtype).itemsize
    t_tile = _choose_t_tile(C, T, x_block_bytes)
    n_t = -(-T // t_tile)                                      # cdiv: ragged T allowed

    gates_kernel = functools.partial(_se_gates_kernel, t_len=T, t_tile=t_tile)

    # Pass 1: gates (B, C, 1); reduction over T with the T axis last in the grid.
    gates = pl.pallas_call(
        gates_kernel,
        out_shape=jax.ShapeDtypeStruct((B, C, 1), jnp.float32),
        grid_spec=pltpu.PrefetchScalarGridSpec(
            num_scalar_prefetch=0,
            grid=(B, n_t),
            in_specs=[
                pl.BlockSpec((1, C, t_tile), lambda b, t: (b, 0, t)),
                pl.BlockSpec((C, Cs), lambda b, t: (0, 0)),
                pl.BlockSpec((1, Cs), lambda b, t: (0, 0)),
                pl.BlockSpec((Cs, C), lambda b, t: (0, 0)),
                pl.BlockSpec((1, C), lambda b, t: (0, 0)),
            ],
            out_specs=pl.BlockSpec((1, C, 1), lambda b, t: (b, 0, 0)),
            scratch_shapes=[pltpu.VMEM((1, C), jnp.float32)],   # f32 time-sum acc
        ),
        compiler_params=pltpu.CompilerParams(
            dimension_semantics=("parallel", "arbitrary"),
            vmem_limit_bytes=_VMEM_LIMIT_BYTES),
        cost_estimate=pl.CostEstimate(
            flops=B * C * T + 4 * B * C * Cs,
            transcendentals=B * C,
            bytes_accessed=B * C * T * itemsize),
    )(x, w1_t, b1, w2_t, b2)

    # Pass 2: y = x * gates, fully parallel elementwise multiply.
    return pl.pallas_call(
        _se_scale_kernel,
        out_shape=jax.ShapeDtypeStruct((B, C, T), x.dtype),
        grid_spec=pltpu.PrefetchScalarGridSpec(
            num_scalar_prefetch=0,
            grid=(B, n_t),
            in_specs=[
                pl.BlockSpec((1, C, t_tile), lambda b, t: (b, 0, t)),
                pl.BlockSpec((1, C, 1), lambda b, t: (b, 0, 0)),
            ],
            out_specs=pl.BlockSpec((1, C, t_tile), lambda b, t: (b, 0, t)),
        ),
        compiler_params=pltpu.CompilerParams(
            dimension_semantics=("parallel", "parallel"),
            vmem_limit_bytes=_VMEM_LIMIT_BYTES),
        cost_estimate=pl.CostEstimate(
            flops=B * C * T,
            transcendentals=0,
            bytes_accessed=2 * B * C * T * itemsize),
    )(x, gates)


def se_connect(x, w1, b1, w2, b2, *,
               x_block_bytes=_DEFAULT_X_BLOCK_BYTES, force_two_pass=False):
    """SE_Connect forward.

    x:  (B, C, T)  activation (f32 or bf16 HBM I/O; all compute in f32).
    w1: (C//s, C), b1: (C//s,)   -- torch nn.Linear(channels, channels//s) layout
    w2: (C, C//s), b2: (C,)      -- torch nn.Linear(channels//s, channels) layout
    """
    B, C, T = x.shape
    Cs = w1.shape[0]

    # (in, out)-layout weights in f32; fold the mean's 1/T into w1 so the kernel
    # accumulates a plain f32 sum over T (no per-element divide, bf16-safe).
    w1_t = jnp.transpose(w1).astype(jnp.float32) / jnp.float32(T)   # (C, C//s)
    w2_t = jnp.transpose(w2).astype(jnp.float32)                    # (C//s, C)
    b1_2d = b1.astype(jnp.float32).reshape(1, Cs)
    b2_2d = b2.astype(jnp.float32).reshape(1, C)

    per_batch_f32_bytes = C * T * 4   # budget in f32-equivalent bytes (compute dtype)
    if (not force_two_pass) and per_batch_f32_bytes <= x_block_bytes:
        return _se_connect_fused(x, w1_t, b1_2d, w2_t, b2_2d)
    return _se_connect_two_pass(x, w1_t, b1_2d, w2_t, b2_2d, x_block_bytes)


# ---------------------------------------------------------------------------
# Pure-JAX reference
# ---------------------------------------------------------------------------

def se_connect_ref(x, w1, b1, w2, b2):
    xf = x.astype(jnp.float32)
    m = xf.mean(axis=2)
    h = jnp.maximum(m @ w1.T.astype(jnp.float32) + b1.astype(jnp.float32), 0.0)
    g = jax.nn.sigmoid(h @ w2.T.astype(jnp.float32) + b2.astype(jnp.float32))
    return (xf * g[:, :, None]).astype(x.dtype)


if __name__ == "__main__":
    def make_inputs(key, B, C, T, s, dtype):
        Cs = C // s
        kx, k1, k2, k3, k4 = jax.random.split(key, 5)
        x = jax.random.normal(kx, (B, C, T), dtype=jnp.float32).astype(dtype)
        w1 = jax.random.normal(k1, (Cs, C), dtype=jnp.float32) / jnp.sqrt(C)
        b1 = jax.random.normal(k2, (Cs,), dtype=jnp.float32) * 0.1
        w2 = jax.random.normal(k3, (C, Cs), dtype=jnp.float32) / jnp.sqrt(Cs)
        b2 = jax.random.normal(k4, (C,), dtype=jnp.float32) * 0.1
        return x, w1, b1, w2, b2

    # 1) Toy shape (B=2, C=16, T=32, s=2): fused single-pass path.
    x, w1, b1, w2, b2 = make_inputs(jax.random.PRNGKey(0), 2, 16, 32, 2, jnp.float32)
    out = jax.block_until_ready(se_connect(x, w1, b1, w2, b2))
    ref = se_connect_ref(x, w1, b1, w2, b2)
    assert out.shape == x.shape and out.dtype == x.dtype
    assert jnp.allclose(out, ref, atol=1e-5, rtol=1e-5), "fused path mismatch"

    # 2) Same inputs, forced two-pass path (gates kernel + scale kernel).
    out2 = jax.block_until_ready(se_connect(x, w1, b1, w2, b2, force_two_pass=True))
    assert jnp.allclose(out2, ref, atol=1e-5, rtol=1e-5), "two-pass mismatch"

    # 3) T-tiled reduction with evenly dividing tiles (T_TILE=128, 2 tiles).
    x3, w13, b13, w23, b23 = make_inputs(jax.random.PRNGKey(1), 2, 128, 256, 2,
                                         jnp.float32)
    out3 = jax.block_until_ready(
        se_connect(x3, w13, b13, w23, b23, x_block_bytes=128 * 128 * 4))
    ref3 = se_connect_ref(x3, w13, b13, w23, b23)
    assert jnp.allclose(out3, ref3, atol=1e-4, rtol=1e-4), "tiled two-pass mismatch"

    # 4) Ragged T (T=200, tile=128): cdiv grid + in-kernel masking of the tail.
    x4, w14, b14, w24, b24 = make_inputs(jax.random.PRNGKey(2), 2, 128, 200, 2,
                                         jnp.float32)
    out4 = jax.block_until_ready(
        se_connect(x4, w14, b14, w24, b24, x_block_bytes=128 * 128 * 4))
    ref4 = se_connect_ref(x4, w14, b14, w24, b24)
    assert jnp.allclose(out4, ref4, atol=1e-4, rtol=1e-4), "ragged-T mismatch"

    # 5) bf16 activations through the fused path (f32 compute, bf16 I/O).
    x5, w15, b15, w25, b25 = make_inputs(jax.random.PRNGKey(3), 2, 64, 128, 2,
                                         jnp.bfloat16)
    out5 = jax.block_until_ready(se_connect(x5, w15, b15, w25, b25))
    ref5 = se_connect_ref(x5, w15, b15, w25, b25)
    assert out5.dtype == jnp.bfloat16
    assert jnp.allclose(out5.astype(jnp.float32), ref5.astype(jnp.float32),
                        atol=3e-2, rtol=3e-2), "bf16 fused mismatch"

    print("KERNEL_OK")
</pallas_src>

<mosaic_0001>
module attributes {stable_mosaic.version = 11 : i64} {
  func.func @_se_fused_kernel(%arg0: i32, %arg1: memref<1x16x32xf32, #tpu.memory_space<vmem>>, %arg2: memref<16x8xf32, #tpu.memory_space<vmem>>, %arg3: memref<1x8xf32, #tpu.memory_space<vmem>>, %arg4: memref<8x16xf32, #tpu.memory_space<vmem>>, %arg5: memref<1x16xf32, #tpu.memory_space<vmem>>, %arg6: memref<1x16x32xf32, #tpu.memory_space<vmem>>) attributes {dimension_semantics = [#tpu.dimension_semantics<parallel>], iteration_bounds = array<i64: 2>, scalar_prefetch = 0 : i64, scratch_operands = 0 : i64, tpu.core_type = #tpu.core_type<tc>, window_params = [{transform_indices = @transform_0, window_bounds = array<i64: 1, 16, 32>}, {pipeline_mode = #tpu.pipeline_mode<synchronous>, transform_indices = @transform_1, window_bounds = array<i64: 16, 8>}, {pipeline_mode = #tpu.pipeline_mode<synchronous>, transform_indices = @transform_2, window_bounds = array<i64: 1, 8>}, {pipeline_mode = #tpu.pipeline_mode<synchronous>, transform_indices = @transform_3, window_bounds = array<i64: 8, 16>}, {pipeline_mode = #tpu.pipeline_mode<synchronous>, transform_indices = @transform_4, window_bounds = array<i64: 1, 16>}, {transform_indices = @transform_5, window_bounds = array<i64: 1, 16, 32>}]} {
    %c0 = arith.constant 0 : index
    %c0_0 = arith.constant 0 : index
    %c0_1 = arith.constant 0 : index
    %0 = vector.load %arg1[%c0, %c0_0, %c0_1] : memref<1x16x32xf32, #tpu.memory_space<vmem>>, vector<1x16x32xf32>
    %cst = arith.constant dense<0.000000e+00> : vector<1x16xf32>
    %1 = vector.multi_reduction <add>, %0, %cst [2] : vector<1x16x32xf32> to vector<1x16xf32>
    %c0_2 = arith.constant 0 : index
    %c0_3 = arith.constant 0 : index
    %2 = vector.load %arg2[%c0_2, %c0_3] : memref<16x8xf32, #tpu.memory_space<vmem>>, vector<16x8xf32>
    %cst_4 = arith.constant dense<0.000000e+00> : vector<1x8xf32>
    %3 = tpu.matmul %1, %2, %cst_4 {dimension_numbers = #tpu.dot_dimension_numbers<[1], [0], [0], [1], [0, 0, 1, 1], [], []>} : vector<1x16xf32>, vector<16x8xf32>, vector<1x8xf32> -> vector<1x8xf32>
    %c0_5 = arith.constant 0 : index
    %c0_6 = arith.constant 0 : index
    %4 = vector.load %arg3[%c0_5, %c0_6] : memref<1x8xf32, #tpu.memory_space<vmem>>, vector<1x8xf32>
    %5 = arith.addf %3, %4 : vector<1x8xf32>
    %cst_7 = arith.constant 0.000000e+00 : f32
    %6 = vector.broadcast %cst_7 : f32 to vector<1x8xf32>
    %7 = arith.maximumf %5, %6 : vector<1x8xf32>
    %c0_8 = arith.constant 0 : index
    %c0_9 = arith.constant 0 : index
    %8 = vector.load %arg4[%c0_8, %c0_9] : memref<8x16xf32, #tpu.memory_space<vmem>>, vector<8x16xf32>
    %cst_10 = arith.constant dense<0.000000e+00> : vector<1x16xf32>
    %9 = tpu.matmul %7, %8, %cst_10 {dimension_numbers = #tpu.dot_dimension_numbers<[1], [0], [0], [1], [0, 0, 1, 1], [], []>} : vector<1x8xf32>, vector<8x16xf32>, vector<1x16xf32> -> vector<1x16xf32>
    %c0_11 = arith.constant 0 : index
    %c0_12 = arith.constant 0 : index
    %10 = vector.load %arg5[%c0_11, %c0_12] : memref<1x16xf32, #tpu.memory_space<vmem>>, vector<1x16xf32>
    %11 = arith.addf %9, %10 : vector<1x16xf32>
    %12 = arith.negf %11 : vector<1x16xf32>
    %13 = math.exp %12 : vector<1x16xf32>
    %cst_13 = arith.constant 1.000000e+00 : f32
    %14 = vector.broadcast %cst_13 : f32 to vector<1x16xf32>
    %15 = arith.addf %14, %13 : vector<1x16xf32>
    %16 = arith.divf %14, %15 : vector<1x16xf32>
    %17 = vector.shape_cast %16 : vector<1x16xf32> to vector<1x16x1xf32>
    %18 = vector.broadcast %17 : vector<1x16x1xf32> to vector<1x16x32xf32>
    %19 = arith.mulf %0, %18 : vector<1x16x32xf32>
    %c0_14 = arith.constant 0 : index
    %c0_15 = arith.constant 0 : index
    %c0_16 = arith.constant 0 : index
    %20 = vector.load %arg6[%c0_14, %c0_15, %c0_16] : memref<1x16x32xf32, #tpu.memory_space<vmem>>, vector<1x16x32xf32>
    tpu.vector_store %arg6[%c0_14, %c0_15, %c0_16], %19 {strides = array<i32>} : memref<1x16x32xf32, #tpu.memory_space<vmem>>, vector<1x16x32xf32>,
    return
  }
  func.func @transform_0(%arg0: i32) -> (i32, i32, i32) {
    %c0_i32 = arith.constant 0 : i32
    %c0_i32_0 = arith.constant 0 : i32
    %c0_i32_1 = arith.constant 0 : i32
    return %arg0, %c0_i32, %c0_i32_0 : i32, i32, i32
  }
  func.func @transform_1(%arg0: i32) -> (i32, i32) {
    %c0_i32 = arith.constant 0 : i32
    %c0_i32_0 = arith.constant 0 : i32
    %c0_i32_1 = arith.constant 0 : i32
    return %c0_i32, %c0_i32_0 : i32, i32
  }
  func.func @transform_2(%arg0: i32) -> (i32, i32) {
    %c0_i32 = arith.constant 0 : i32
    %c0_i32_0 = arith.constant 0 : i32
    %c0_i32_1 = arith.constant 0 : i32
    return %c0_i32, %c0_i32_0 : i32, i32
  }
  func.func @transform_3(%arg0: i32) -> (i32, i32) {
    %c0_i32 = arith.constant 0 : i32
    %c0_i32_0 = arith.constant 0 : i32
    %c0_i32_1 = arith.constant 0 : i32
    return %c0_i32, %c0_i32_0 : i32, i32
  }
  func.func @transform_4(%arg0: i32) -> (i32, i32) {
    %c0_i32 = arith.constant 0 : i32
    %c0_i32_0 = arith.constant 0 : i32
    %c0_i32_1 = arith.constant 0 : i32
    return %c0_i32, %c0_i32_0 : i32, i32
  }
  func.func @transform_5(%arg0: i32) -> (i32, i32, i32) {
    %c0_i32 = arith.constant 0 : i32
    %c0_i32_0 = arith.constant 0 : i32
    %c0_i32_1 = arith.constant 0 : i32
    return %arg0, %c0_i32, %c0_i32_0 : i32, i32, i32
  }
}

</mosaic_0001>

<bundles_post_ra>
// kernel: tpu_custom_call.1
= control target key start
LH: loop header
LB: loop body
LE: loop exit
PB: predicated region body
PF: predicated region fallthrough
CT: control target
= control target key end

     0   :  { %10 = vsyncpa [#allocation3], 0  ;;  %s929_s0 = inlined_call_operand.hbm [shape: f32[2,16,32], index: 0, kind: input, shape index: {}]   ;;  %s930_s1 = inlined_call_operand.vmem [shape: f32[16,8], index: 1, kind: input, shape index: {}]   ;;  %s931_s2 = inlined_call_operand.vmem [shape: f32[1,8], index: 2, kind: input, shape index: {}]   ;;  %s932_s3 = inlined_call_operand.vmem [shape: f32[8,16], index: 3, kind: input, shape index: {}]   ;;  %s933_s4 = inlined_call_operand.vmem [shape: f32[1,16], index: 4, kind: input, shape index: {}]   ;;  %s934_s5 = inlined_call_operand.hbm [shape: f32[2,16,32], index: 5, kind: output, shape index: {}]  }
   0x1   :  { %12 = vsyncpa [#allocation3 + $0x1], 0 }
   0x2   :  { %13 = vsyncpa [#allocation4], 0 }
   0x3   :  { %15 = vsyncpa [#allocation4 + $0x1], 0  ;;  %s752_s18 = smov 0   ;;  %s754_s19 = smov 0  }
   0x4   :  { %s756_s20 = smov 0   ;;  %s758_s21 = smov 0  }
   0x5 LB: > { %s773_s22 = sadd.s32 4294967295, %s712_s21   ;;  %s528_s23 = sadd.s32 4294967294, %s712_s21   ;;  %s712_s21 = sphi %s758_s21, %s949_s21   ;;  %s708_s20 = sphi %s756_s20, %s948_s20   ;;  %s704_s19 = sphi %s754_s19, %s947_s19   ;;  %s700_s18 = sphi %s752_s18, %s946_s18  }
   0x6   : > { %s777_s24 = sadd.s32 1, %s712_s21   ;;  %s28_s25 = sadd.s32 1, %s708_s20 }
   0x7   : > { %s25_s26 = ssub.s32 %s712_s21, %s777_s24  ;;  %p35_p0 = scmp.ne.s32.totalorder %s708_s20, %s704_s19 }
   0x8   : > { %p26_p1 = scmp.eq.s32.totalorder %s25_s26, 0  ;;  %p36_p2 = scmp.eq.s32.totalorder %s712_s21, 0 }
   0x9   : > { %p41_p3 = scmp.ne.s32.totalorder %s704_s19, %s700_s18  ;;  %p42_p4 = scmp.eq.s32.totalorder %s773_s22, 0 }
   0xa   : > { %s789_s27 = scalar_select %p26_p1, %s708_s20, %s28_s25  }
   0xb   : > { %p791_p5 = por %p36_p2, %p35_p0  ;;  %p795_p6 = por %p42_p4, %p41_p3 }
   0xc   : > { %p149_p7 = scmp.eq.s32.totalorder %s773_s22, 1  ;;  %p155_p8 = scmp.eq.s32.totalorder %s528_s23, 1 }
   0xd   : > { %s938_s29 = scalar_select %p795_p6, 1, 0 }
   0xe   : > { %p576_p10 = scmp.lt.s32.totalorder %s712_s21, 2  ;;  %p802_p11 = por %p149_p7, %p35_p0 }
   0xf   : > { %p806_p12 = por %p155_p8, %p41_p3  ;;  %s187_s7 = sand.u32 1, %s708_s20  }
  0x10   : > { %s939_s30 = scalar_select %p802_p11, 1, 0 }
  0x11   : > { %s940_s6 = scalar_select %p806_p12, 1, 0 }
  0x12   : > { %s545_s8 = sshll.u32 %s712_s21, 8  ;;  %s531_s9 = sshll.u32 %s187_s7, 4 }
  0x13   : > { %s815_s12 = scalar_lea.hbm %s929_s0, %s545_s8  ;;  %s191_s13 = scalar_lea.vmem [#allocation2], %s531_s9 }
  0x14   : > { %s198_s14 = sshll.u32 %s191_s13, 4  ;;  %p819_p13 = pnand %p576_p10, %p791_p5  ;;  %s823_s14 = int_to_ptr.vmem [resolvable:$true] %s198_s14 }
  0x15   : > { %s825_s16 = scalar_lea.sflag [#allocation3], %s187_s7  ;;  %s620_s17 = scalar_lea.hbm %s815_s12, 256 }
  0x16   : > { %p621_p0 = scmp.ne.s32.totalorder %s815_s12, %s620_s17  ;;  %p622_p1 = pneg %p819_p13 }
  0x17   : > { %s625_s26 = scalar_lea.hbm %s929_s0, 512  ;;  %p626_p4 = scmp.lt.s32.totalorder %s815_s12, %s929_s0 }
  0x18   : > { %p623_p2 = pnand %p622_p1, %p621_p0  ;;  %p627_p5 = scmp.lt.s32.totalorder %s625_s26, %s620_s17 }
  0x1a   : > { %p624_p3 = pneg %p623_p2  ;;  %p628_p7 = por %p627_p5, %p626_p4 }
  0x1c   : > { %p629_p8 = pnand %p628_p7, %p624_p3 }
  0x1e   : > { %632 = shalt.err (!%p629_p8)
}
  0x1f   : > { %s633_s7 = scalar_lea.vmem %s823_s14, 256  ;;  %s714_s9 = smov [#allocation2]  }
  0x20   : > { %p634_p10 = scmp.ne.s32.totalorder %s823_s14, %s633_s7  ;;  %s638_s10 = sshll.u32 %s714_s9, 4  ;;  %s639_s10 = int_to_ptr.vmem [resolvable:$false] %s638_s10 }
  0x21   : > { %s640_s11 = scalar_lea.vmem %s639_s10, 512  ;;  %p641_p2 = scmp.lt.s32.totalorder %s823_s14, %s639_s10 }
  0x22   : > { %p636_p9 = pnand %p634_p10, %p622_p1  ;;  %p642_p12 = scmp.lt.s32.totalorder %s640_s11, %s633_s7 }
  0x24   : > { %p637_p0 = pneg %p636_p9  ;;  %p643_p11 = por %p642_p12, %p641_p2 }
  0x26   : > { %p644_p6 = pnand %p643_p11, %p637_p0 }
  0x28   : > { %647 = shalt.err (!%p644_p6)
}
  0x29   : > { %s715_s13 = smov 128   ;;  %s716_s17 = smov 8  }
  0x2a   : > { %571 = dma.hbm_to_vmem [thread:$0]  (!%p819_p13), %s815_s12, 256, %s823_s14, %s825_s16, %s715_s13, %s715_s13, %s716_s17  }
  0x2b   : > { %p534_p9 = scmp.ge.s32.totalorder %s712_s21, 1  ;;  %p206_p1 = scmp.lt.s32.totalorder %s712_s21, 3 }
  0x2d   : > { %p207_p3 = pnand %p534_p9, %p206_p1 }
  0x2e   : > { %s849_s23 = sand.u32 (!%p207_p3), 1, %s704_s19   ;;  %p942_p6 = scmp.ne.s32.totalorder (!%p207_p3), %s938_s29, 0 }
  0x2f   : > { %210 = sbr.rel (%p207_p3) target bundleno = 761 (0x2f9), region = 40  ;;  %s535_s25 = sshll.u32 (!%p207_p3), %s849_s23, 4 }
  0x30   : > { %s213_s26 = scalar_lea.sflag (!%p207_p3), [#allocation3], %s849_s23  ;;  %s216_s28 = scalar_lea.vmem (!%p207_p3), [#allocation2], %s535_s25 }
  0x34   : > { %691 = dma.done.wait (%p942_p6), %s213_s26, 256  }
  0x35   : > { %693 = vsyncadd (%p942_p6), %s213_s26, 4294967040  ;;  %vm245_vm0 = vcmask 261120   ;;  %v243_v0 = vld [vmem:[%s216_s28] sm:$0xff]  ;;  %v244_v1 = vld [vmem:[%s216_s28 + $0x8] sm:$0xff]  ;;  %v717_v4 = vmov 0.0   ;;  %vm718_vm1 = vmmov 0   ;;  %v257_v7 = vlaneseq }
  0x36   : > { %v246_v2 = vsel %vm245_vm0, %v243_v0, 0.0  ;;  %v249_v3 = vsel %vm245_vm0, %v244_v1, 0.0  ;;  %552 = vmatprep.subr.mxu0 %v717_v4  ;;  %559 = vmatprep.subr.mxu1 %v717_v4  ;;  %v253_v5 = vld [vmem:[%s930_s1 + $0x8] sm:$0xff]  ;;  %v252_v6 = vld [vmem:[%s930_s1] sm:$0xff]  ;;  %vm268_vm2 = vcmask 130112   ;;  %vm270_vm3 = vcmask 130048  }
  0x37   : > { %247 = vadd.xlane.f32.xlu0 %v246_v2  ;;  %553 = vmatpush3.msra.mxu0 %v253_v5  ;;  %v258_v8 = vand.u32 127, %v257_v7  ;;  %v260_v9 = vshrl.u32 %v257_v7, 7  ;;  %v344_v18 = vld [vmem:[%s932_s3] sm:$0xff]  ;;  %vm346_vm4 = vcmask 64512   ;;  %s242_s13 = scalar_lea.vmem [#allocation5], %s535_s25  ;;  %s546_s26 = sshll.u32 %s773_s22, 8 }
  0x38   : > { %554 = vmatprep.subr.mxu0 %v717_v4  ;;  %556 = vmatprep.mubr.msk.f32.mxu0 %vm718_vm1, %v717_v4  ;;  %v254_v19 = vld [vmem:[%s931_s2] sm:$0x1]  ;;  %s455_s17 = sshll.u32 %s242_s13, 4  ;;  %s885_s14 = scalar_lea.hbm %s934_s5, %s546_s26  ;;  %s879_s17 = int_to_ptr.vmem [resolvable:$true] %s455_s17 }
  0x39   : > { %555 = vmatpush3.msra.mxu0 %v252_v6  ;;  %561 = vmatprep.mubr.msk.f32.mxu1 %vm718_vm1, %v717_v4  ;;  %v263_v10 = vadd.s32 4294967288, %v258_v8  ;;  %v261_v12 = vsub.s32 %v258_v8, %v260_v9  ;;  %v345_v24 = vld [vmem:[%s933_s4] sm:$0x1]  ;;  %v428_v31 = vsub.s32 0, %v260_v9  ;;  %s442_s25 = scalar_lea.sflag [#allocation4], %s849_s23  ;;  %s648_s15 = scalar_lea.vmem %s879_s17, 256 }
  0x3a   : > { %560 = vmatpush3.msra.mxu1 %v344_v18  ;;  %p649_p11 = scmp.ne.s32.totalorder %s879_s17, %s648_s15  ;;  %p943_p12 = scmp.ne.s32.totalorder %s939_s30, 0 }
  0x3b   : > { %250 = vadd.xlane.f32.xlu0 %v249_v3  ;;  %v266_v13 = vsub.s32 %v263_v10, %v260_v9  ;;  %s719_s22 = smov [#allocation5]  }
  0x3c   : > { %p650_p13 = pnand %p649_p11, %p943_p12  ;;  %s652_s29 = sshll.u32 %s719_s22, 4  ;;  %s653_s29 = int_to_ptr.vmem [resolvable:$false] %s652_s29 }
  0x3d   : > { %s654_s16 = scalar_lea.vmem %s653_s29, 512  ;;  %p655_p5 = scmp.lt.s32.totalorder %s879_s17, %s653_s29 }
  0x3e   : > { %p651_p4 = pneg %p650_p13  ;;  %p656_p7 = scmp.lt.s32.totalorder %s654_s16, %s648_s15 }
  0x40   : > { %p657_p8 = por %p656_p7, %p655_p5 }
  0x42   : > { %p658_p10 = pnand %p657_p8, %p651_p4 }
  0xc0   : > { %v248_v11 = vpop.xlane.xlu0 %247 }
  0xc1   : > { %v262_v15 = vrot.slane %v248_v11, %v261_v12 }
  0xc4   : > { %v251_v14 = vpop.xlane.xlu0 %250 }
  0xc5   : > { %v267_v16 = vrot.slane %v251_v14, %v266_v13 }
  0xc7   : > { %v269_v17 = vsel %vm268_vm2, %v267_v16, %v262_v15 }
  0xc8   : > { %557 = vmatmul.mubr.msk.f32.vlgmr.msra.gmra.mxu0 %vm270_vm3, %v269_v17 }
 0x188   : > { %v339_v20 = vpop.f32.mrf.mxu0 }
 0x189   : > { %v340_v21 = vadd.f32 %v339_v20, %v254_v19 }
 0x18a   : > { %v558_v22 = vpop.f32.mrf.mxu0 }
 0x18b   : > { %v343_v23 = vmax.f32 %v340_v21, 0.0 }
 0x18d   : > { %562 = vmatmul.mubr.msk.f32.vlgmr.msra.gmra.mxu1 %vm346_vm4, %v343_v23 }
 0x24d   : > { %v416_v25 = vpop.f32.mrf.mxu1 }
 0x24e   : > { %v417_v26 = vadd.f32 %v416_v25, %v345_v24 }
 0x24f   : > { %v563_v27 = vpop.f32.mrf.mxu1 }
 0x250   : > { %v539_v28 = vmul.f32 -1.442695, %v417_v26 }
 0x252   : > { %616 = vpow2.f32 %v539_v28 }
 0x25f   : > { %v617_v29 = vpop.eup %616 }
 0x260   : > { %v423_v30 = vadd.f32 1.0, %v617_v29 }
 0x262   : > { %618 = vrcp.f32 %v423_v30 }
 0x26f   : > { %v619_v32 = vpop.eup %618 }
 0x270   : > { %v429_v33 = vrot.slane %v619_v32, %v428_v31 }
 0x272   : > { %431 = vbcast.lane.b32.xlu1 %v429_v33, 256 }
 0x276   : > { %435 = vbcast.lane.b32.xlu1 %v429_v33, 264 }
 0x2e4   : > { %v432_v34 = vpop.permute.xlu1 %431 }
 0x2e5   : > { %v437_v35 = vmul.f32 %v432_v34, %v243_v0 }
 0x2e7   : > { %439 = vst.msk [vmem:[%s242_s13] sm:$0xff] %vm245_vm0, %v437_v35 }
 0x2e8   : > { %v436_v36 = vpop.permute.xlu1 %435 }
 0x2e9   : > { %v438_v37 = vmul.f32 %v436_v36, %v244_v1 }
 0x2eb   : > { %440 = vst.msk [vmem:[%s242_s13 + $0x8] sm:$0xff] %vm245_vm0, %v438_v37 }
 0x2ec   : > { %661 = shalt.err (!%p658_p10)
}
 0x2ed   : > { %s662_s8 = scalar_lea.hbm %s885_s14, 256  ;;  %s666_s10 = scalar_lea.hbm %s934_s5, 512 }
 0x2ee   : > { %p663_p0 = scmp.ne.s32.totalorder %s885_s14, %s662_s8  ;;  %p667_p1 = scmp.lt.s32.totalorder %s885_s14, %s934_s5 }
 0x2ef   : > { %p668_p3 = scmp.lt.s32.totalorder %s666_s10, %s662_s8 }
 0x2f0   : > { %p664_p2 = pnand %p663_p0, %p943_p12 }
 0x2f1   : > { %p669_p6 = por %p668_p3, %p667_p1 }
 0x2f2   : > { %p665_p9 = pneg %p664_p2 }
 0x2f4   : > { %p670_p11 = pnand %p669_p6, %p665_p9 }
 0x2f6   : > { %673 = shalt.err (!%p670_p11)
}
 0x2f7   : > { %s720_s26 = smov 128   ;;  %s721_s28 = smov 8  }
 0x2f8   : > { %566 = dma.vmem_to_hbm [thread:$0]  (%p943_p12), %s879_s17, 256, %s885_s14, %s442_s25, %s720_s26, %s720_s26, %s721_s28  }
 0x2f9 PF: > { %s470_s12 = sand.u32 1, %s700_s18   ;;  %p944_p13 = scmp.ne.s32.totalorder %s940_s6, 0 }
 0x2fa   : > { %p945_p4 = scmp.ge.s32.totalorder %s712_s21, 2  ;;  %s471_s15 = scalar_lea.sflag [#allocation4], %s470_s12 }
 0x2fc   : > { %p573_p5 = pnand %p945_p4, %p944_p13 }
 0x2fe   : > { %p574_p7 = pneg %p573_p5 }
 0x300   : > { %695 = dma.done.wait (%p574_p7), %s471_s15, 256  }
 0x301   : > { %697 = vsyncadd (%p574_p7), %s471_s15, 4294967040  ;;  %p18_p8 = scmp.ge.s32.totalorder %s777_s24, 4   ;;  %s946_s18 = smov %s704_s19 }
 0x302   : > { %s947_s19 = smov %s708_s20  ;;  %s948_s20 = smov %s789_s27 }
 0x303   : > { %s949_s21 = smov %s777_s24  ;;  %20 = sbr.rel (!%p18_p8) target bundleno = 5 (0x5), region = 85 }
 0x308   :  { %476 = vsyncpa [#allocation3], 1 }
 0x309   :  { %478 = vsyncpa [#allocation3 + $0x1], 1 }
 0x30a   :  { %479 = vsyncpa [#allocation4], 1 }
 0x30b   :  { %481 = vsyncpa [#allocation4 + $0x1], 1 }

</bundles_post_ra>
